<compile_context>
chip_gen: v6e
topology: v6e:2x2x1
jax: 0.10.0
libtpu: 0.0.40
codegen_flags: <defaults>
</compile_context>

<pallas_src>
import math

import jax
import jax.numpy as jnp
from jax.experimental import pallas as pl
from jax.experimental.pallas import tpu as pltpu

HIDDEN = 20   # matches hidden_size=20 default in the PyTorch module


def _pinn_mlp_kernel(x_ref, p1_ref, w23_ref, b23_ref, p4_ref, o_ref):
    """Full MLP forward for one lane-major batch tile, entirely in VMEM.

    x_ref  : (1, TM)      batch tile, batch on lanes
    p1_ref : (H, 2)       [:, 0:1] = w1, [:, 1:2] = b1
    w23_ref: (2, H, H)    stacked w2, w3 (PyTorch (out, in) layout)
    b23_ref: (2, H, 1)    stacked b2, b3
    p4_ref : (1, H+1)     [:, :H] = w4, [:, H:] = b4
    o_ref  : (1, TM)      output tile, batch on lanes
    """
    h_dim = w23_ref.shape[1]
    x = x_ref[...]                                              # (1, TM) f32

    # Layer 1: K=1 outer product -> VPU broadcast multiply (keep MXU free).
    w1 = p1_ref[:, 0:1]                                         # (H, 1)
    b1 = p1_ref[:, 1:2]                                         # (H, 1)
    h = jnp.tanh(w1 * x + b1)                                   # (H, TM)

    # Layer 2: (H,H) @ (H,TM) on the MXU, lane-dense activations.
    h = jnp.tanh(
        jnp.dot(w23_ref[0], h, preferred_element_type=jnp.float32) + b23_ref[0]
    )
    # Layer 3: (H,H) @ (H,TM)
    h = jnp.tanh(
        jnp.dot(w23_ref[1], h, preferred_element_type=jnp.float32) + b23_ref[1]
    )
    # Layer 4 (no activation): (1,H) @ (H,TM) -> (1,TM), lane-dense output.
    w4 = p4_ref[:, :h_dim]                                      # (1, H)
    b4 = p4_ref[:, h_dim:h_dim + 1]                             # (1, 1)
    y = jnp.dot(w4, h, preferred_element_type=jnp.float32) + b4

    o_ref[...] = y.astype(o_ref.dtype)


def _dual_tensorcore_chip():
    """Best-effort detection of chips with >1 TensorCore visible to one device."""
    try:
        kind = jax.devices()[0].device_kind.lower()
    except Exception:  # pragma: no cover - defensive, never fatal
        return False
    return any(tag in kind for tag in ("v3", "v4", "v7"))


def _select_tiling(n, *, dual_tc, max_tile_m=32768, lane=128):
    """Pick (tile_m, num_steps): one big tile on single-TC chips, an even
    number of lane-aligned tiles on dual-TC chips, capped by a VMEM budget."""
    steps = 2 if dual_tc else 1
    while True:
        tile = math.ceil(n / steps)
        tile = math.ceil(tile / lane) * lane
        if tile <= max_tile_m:
            return tile, steps
        steps += 2 if dual_tc else 1


def pinn_forward(x, params, *, tile_m=None):
    """Run the PINN MLP forward pass with a Pallas TPU kernel.

    x      : (N, 1) float32
    params : dict of w1..w4 (PyTorch (out, in) layout) and b1..b4 ((out,))
    Returns (N, 1) float32.
    """
    n = x.shape[0]
    h = params["w2"].shape[0]

    if tile_m is None:
        tile_m, steps = _select_tiling(n, dual_tc=_dual_tensorcore_chip())
    else:
        steps = math.ceil(n / tile_m)
    n_pad = tile_m * steps

    # Pad batch to tile_m * steps.  (For very large N a scalar-prefetch length
    # + in-kernel masking would avoid this extra copy; negligible at small N.)
    x_lane = jnp.pad(x.astype(jnp.float32).reshape(1, -1),
                     ((0, 0), (0, n_pad - n)))                  # (1, n_pad)

    # Consolidate the 8 tiny parameter tensors into 4 packed operands.
    p1 = jnp.concatenate(
        [params["w1"].astype(jnp.float32),
         params["b1"].astype(jnp.float32).reshape(h, 1)], axis=1)       # (H, 2)
    w23 = jnp.stack([params["w2"], params["w3"]]).astype(jnp.float32)   # (2, H, H)
    b23 = jnp.stack([params["b2"].reshape(h, 1),
                     params["b3"].reshape(h, 1)]).astype(jnp.float32)   # (2, H, 1)
    p4 = jnp.concatenate(
        [params["w4"].astype(jnp.float32),
         params["b4"].astype(jnp.float32).reshape(1, 1)], axis=1)       # (1, H+1)

    def resident(arr):
        zeros = (0,) * arr.ndim
        return pl.BlockSpec(arr.shape, lambda i, _z=zeros: _z)

    in_specs = [
        pl.BlockSpec((1, tile_m), lambda i: (0, i)),            # x tile (lane-dense)
        resident(p1), resident(w23), resident(b23), resident(p4),
    ]
    out_spec = pl.BlockSpec((1, tile_m), lambda i: (0, i))      # lane-dense output

    param_bytes = 4 * (p1.size + w23.size + b23.size + p4.size)
    cost = pl.CostEstimate(
        flops=n_pad * (4 * h * h + 4 * h),
        transcendentals=3 * n_pad * h,
        bytes_accessed=8 * n_pad + param_bytes,   # x + y + params (fetched once)
    )

    y_lane = pl.pallas_call(
        _pinn_mlp_kernel,
        out_shape=jax.ShapeDtypeStruct((1, n_pad), jnp.float32),
        grid_spec=pltpu.PrefetchScalarGridSpec(
            num_scalar_prefetch=0,
            grid=(steps,),
            in_specs=in_specs,
            out_specs=out_spec,
        ),
        compiler_params=pltpu.CompilerParams(
            dimension_semantics=("parallel",),       # dual-TC sharding on v7x
            vmem_limit_bytes=32 * 1024 * 1024,       # explicit, safe on v5e..v7x
        ),
        cost_estimate=cost,
    )(x_lane, p1, w23, b23, p4)

    return y_lane[0, :n].reshape(n, 1)


def init_params(key, hidden=HIDDEN):
    """Deterministic init mirroring PyTorch nn.Linear defaults:
    U(-1/sqrt(fan_in), 1/sqrt(fan_in)) for both weight and bias.
    Weights in PyTorch layout (out_features, in_features); biases (out,)."""
    dims = [(hidden, 1), (hidden, hidden), (hidden, hidden), (1, hidden)]
    params = {}
    for idx, (fan_out, fan_in) in enumerate(dims, start=1):
        key, kw, kb = jax.random.split(key, 3)
        bound = 1.0 / jnp.sqrt(jnp.float32(fan_in))
        params[f"w{idx}"] = jax.random.uniform(
            kw, (fan_out, fan_in), jnp.float32, -bound, bound)
        params[f"b{idx}"] = jax.random.uniform(
            kb, (fan_out,), jnp.float32, -bound, bound)
    return params


def pinn_forward_ref(x, params):
    """Pure-JAX reference (full-precision f32) for correctness checking."""
    hp = jax.lax.Precision.HIGHEST
    h = jnp.tanh(jnp.dot(x, params["w1"].T, precision=hp) + params["b1"])
    h = jnp.tanh(jnp.dot(h, params["w2"].T, precision=hp) + params["b2"])
    h = jnp.tanh(jnp.dot(h, params["w3"].T, precision=hp) + params["b3"])
    return jnp.dot(h, params["w4"].T, precision=hp) + params["b4"]


if __name__ == "__main__":
    key = jax.random.PRNGKey(0)
    key, kx = jax.random.split(key)

    N = 1000                       # collocation points (pads to a lane multiple)
    x = jax.random.uniform(kx, (N, 1), jnp.float32, 0.0, 1.0)

    params = init_params(key, hidden=HIDDEN)

    out = pinn_forward(x, params)
    out = jax.block_until_ready(out)

    ref = pinn_forward_ref(x, params)
    assert out.shape == (N, 1)
    # Tolerance allows for MXU multi-pass f32 matmul vs XLA HIGHEST reference.
    assert jnp.allclose(out, ref, atol=1e-3, rtol=1e-3), "mismatch vs reference"

    print("KERNEL_OK")
</pallas_src>

<mosaic_0001>
module attributes {stable_mosaic.version = 11 : i64} {
  func.func @_pinn_mlp_kernel(%arg0: i32, %arg1: memref<1x1024xf32, #tpu.memory_space<vmem>>, %arg2: memref<20x2xf32, #tpu.memory_space<vmem>>, %arg3: memref<2x20x20xf32, #tpu.memory_space<vmem>>, %arg4: memref<2x20x1xf32, #tpu.memory_space<vmem>>, %arg5: memref<1x21xf32, #tpu.memory_space<vmem>>, %arg6: memref<1x1024xf32, #tpu.memory_space<vmem>>) attributes {dimension_semantics = [#tpu.dimension_semantics<parallel>], iteration_bounds = array<i64: 1>, scalar_prefetch = 0 : i64, scratch_operands = 0 : i64, tpu.core_type = #tpu.core_type<tc>, window_params = [{transform_indices = @transform_0, window_bounds = array<i64: 1, 1024>}, {pipeline_mode = #tpu.pipeline_mode<synchronous>, transform_indices = @transform_1, window_bounds = array<i64: 20, 2>}, {pipeline_mode = #tpu.pipeline_mode<synchronous>, transform_indices = @transform_2, window_bounds = array<i64: 2, 20, 20>}, {pipeline_mode = #tpu.pipeline_mode<synchronous>, transform_indices = @transform_3, window_bounds = array<i64: 2, 20, 1>}, {pipeline_mode = #tpu.pipeline_mode<synchronous>, transform_indices = @transform_4, window_bounds = array<i64: 1, 21>}, {transform_indices = @transform_5, window_bounds = array<i64: 1, 1024>}]} {
    %c0 = arith.constant 0 : index
    %c0_0 = arith.constant 0 : index
    %0 = vector.load %arg1[%c0, %c0_0] : memref<1x1024xf32, #tpu.memory_space<vmem>>, vector<1x1024xf32>
    %c0_1 = arith.constant 0 : index
    %c0_2 = arith.constant 0 : index
    %1 = vector.load %arg2[%c0_1, %c0_2] : memref<20x2xf32, #tpu.memory_space<vmem>>, vector<20x1xf32>
    %c0_3 = arith.constant 0 : index
    %c1 = arith.constant 1 : index
    %2 = vector.load %arg2[%c0_3, %c1] : memref<20x2xf32, #tpu.memory_space<vmem>>, vector<20x1xf32>
    %3 = vector.broadcast %1 : vector<20x1xf32> to vector<20x1024xf32>
    %4 = vector.broadcast %0 : vector<1x1024xf32> to vector<20x1024xf32>
    %5 = arith.mulf %3, %4 : vector<20x1024xf32>
    %6 = vector.broadcast %2 : vector<20x1xf32> to vector<20x1024xf32>
    %7 = arith.addf %5, %6 : vector<20x1024xf32>
    %8 = math.tanh %7 : vector<20x1024xf32>
    %c0_4 = arith.constant 0 : index
    %c0_5 = arith.constant 0 : index
    %c0_6 = arith.constant 0 : index
    %9 = vector.load %arg3[%c0_4, %c0_5, %c0_6] : memref<2x20x20xf32, #tpu.memory_space<vmem>>, vector<1x20x20xf32>
    %10 = vector.shape_cast %9 : vector<1x20x20xf32> to vector<20x20xf32>
    %cst = arith.constant dense<0.000000e+00> : vector<20x1024xf32>
    %11 = tpu.matmul %10, %8, %cst {dimension_numbers = #tpu.dot_dimension_numbers<[1], [0], [0], [1], [0, 0, 1, 1], [], []>} : vector<20x20xf32>, vector<20x1024xf32>, vector<20x1024xf32> -> vector<20x1024xf32>
    %c0_7 = arith.constant 0 : index
    %c0_8 = arith.constant 0 : index
    %c0_9 = arith.constant 0 : index
    %12 = vector.load %arg4[%c0_7, %c0_8, %c0_9] : memref<2x20x1xf32, #tpu.memory_space<vmem>>, vector<1x20x1xf32>
    %13 = vector.shape_cast %12 : vector<1x20x1xf32> to vector<20x1xf32>
    %14 = vector.broadcast %13 : vector<20x1xf32> to vector<20x1024xf32>
    %15 = arith.addf %11, %14 : vector<20x1024xf32>
    %16 = math.tanh %15 : vector<20x1024xf32>
    %c1_10 = arith.constant 1 : index
    %c0_11 = arith.constant 0 : index
    %c0_12 = arith.constant 0 : index
    %17 = vector.load %arg3[%c1_10, %c0_11, %c0_12] : memref<2x20x20xf32, #tpu.memory_space<vmem>>, vector<1x20x20xf32>
    %18 = vector.shape_cast %17 : vector<1x20x20xf32> to vector<20x20xf32>
    %cst_13 = arith.constant dense<0.000000e+00> : vector<20x1024xf32>
    %19 = tpu.matmul %18, %16, %cst_13 {dimension_numbers = #tpu.dot_dimension_numbers<[1], [0], [0], [1], [0, 0, 1, 1], [], []>} : vector<20x20xf32>, vector<20x1024xf32>, vector<20x1024xf32> -> vector<20x1024xf32>
    %c1_14 = arith.constant 1 : index
    %c0_15 = arith.constant 0 : index
    %c0_16 = arith.constant 0 : index
    %20 = vector.load %arg4[%c1_14, %c0_15, %c0_16] : memref<2x20x1xf32, #tpu.memory_space<vmem>>, vector<1x20x1xf32>
    %21 = vector.shape_cast %20 : vector<1x20x1xf32> to vector<20x1xf32>
    %22 = vector.broadcast %21 : vector<20x1xf32> to vector<20x1024xf32>
    %23 = arith.addf %19, %22 : vector<20x1024xf32>
    %24 = math.tanh %23 : vector<20x1024xf32>
    %c0_17 = arith.constant 0 : index
    %c0_18 = arith.constant 0 : index
    %25 = vector.load %arg5[%c0_17, %c0_18] : memref<1x21xf32, #tpu.memory_space<vmem>>, vector<1x20xf32>
    %c0_19 = arith.constant 0 : index
    %c20 = arith.constant 20 : index
    %26 = vector.load %arg5[%c0_19, %c20] : memref<1x21xf32, #tpu.memory_space<vmem>>, vector<1x1xf32>
    %cst_20 = arith.constant dense<0.000000e+00> : vector<1x1024xf32>
    %27 = tpu.matmul %25, %24, %cst_20 {dimension_numbers = #tpu.dot_dimension_numbers<[1], [0], [0], [1], [0, 0, 1, 1], [], []>} : vector<1x20xf32>, vector<20x1024xf32>, vector<1x1024xf32> -> vector<1x1024xf32>
    %28 = vector.broadcast %26 : vector<1x1xf32> to vector<1x1024xf32>
    %29 = arith.addf %27, %28 : vector<1x1024xf32>
    %c0_21 = arith.constant 0 : index
    %c0_22 = arith.constant 0 : index
    %30 = vector.load %arg6[%c0_21, %c0_22] : memref<1x1024xf32, #tpu.memory_space<vmem>>, vector<1x1024xf32>
    tpu.vector_store %arg6[%c0_21, %c0_22], %29 {strides = array<i32>} : memref<1x1024xf32, #tpu.memory_space<vmem>>, vector<1x1024xf32>,
    return
  }
  func.func @transform_0(%arg0: i32) -> (i32, i32) {
    %c0_i32 = arith.constant 0 : i32
    %c0_i32_0 = arith.constant 0 : i32
    return %c0_i32, %arg0 : i32, i32
  }
  func.func @transform_1(%arg0: i32) -> (i32, i32) {
    %c0_i32 = arith.constant 0 : i32
    %c0_i32_0 = arith.constant 0 : i32
    %c0_i32_1 = arith.constant 0 : i32
    return %c0_i32, %c0_i32_0 : i32, i32
  }
  func.func @transform_2(%arg0: i32) -> (i32, i32, i32) {
    %c0_i32 = arith.constant 0 : i32
    %c0_i32_0 = arith.constant 0 : i32
    %c0_i32_1 = arith.constant 0 : i32
    %c0_i32_2 = arith.constant 0 : i32
    return %c0_i32, %c0_i32_0, %c0_i32_1 : i32, i32, i32
  }
  func.func @transform_3(%arg0: i32) -> (i32, i32, i32) {
    %c0_i32 = arith.constant 0 : i32
    %c0_i32_0 = arith.constant 0 : i32
    %c0_i32_1 = arith.constant 0 : i32
    %c0_i32_2 = arith.constant 0 : i32
    return %c0_i32, %c0_i32_0, %c0_i32_1 : i32, i32, i32
  }
  func.func @transform_4(%arg0: i32) -> (i32, i32) {
    %c0_i32 = arith.constant 0 : i32
    %c0_i32_0 = arith.constant 0 : i32
    %c0_i32_1 = arith.constant 0 : i32
    return %c0_i32, %c0_i32_0 : i32, i32
  }
  func.func @transform_5(%arg0: i32) -> (i32, i32) {
    %c0_i32 = arith.constant 0 : i32
    %c0_i32_0 = arith.constant 0 : i32
    return %c0_i32, %arg0 : i32, i32
  }
}

</mosaic_0001>

<bundles_post_ra>
// kernel: tpu_custom_call.1
= control target key start
LH: loop header
LB: loop body
LE: loop exit
PB: predicated region body
PF: predicated region fallthrough
CT: control target
= control target key end

     0   :  { %v1620_v1 = vmov 1   ;;  %v1621_v2 = vmov 0   ;;  %s1892_s0 = inlined_call_operand.vmem [shape: f32[1,1024], index: 0, kind: input, shape index: {}]   ;;  %s1893_s1 = inlined_call_operand.vmem [shape: f32[20,2], index: 1, kind: input, shape index: {}]   ;;  %s1894_s2 = inlined_call_operand.vmem [shape: f32[2,20,20], index: 2, kind: input, shape index: {}]   ;;  %s1895_s3 = inlined_call_operand.vmem [shape: f32[2,20,1], index: 3, kind: input, shape index: {}]   ;;  %s1896_s4 = inlined_call_operand.vmem [shape: f32[1,21], index: 4, kind: input, shape index: {}]   ;;  %s1897_s5 = inlined_call_operand.hbm [shape: f32[1,1024], index: 5, kind: output, shape index: {}]  }
   0x1   :  { %v24_v0 = vld [vmem:[%s1893_s1 + $0x10] sm:$0xf]  ;;  %1447 = vset.pattern.permute.xlu1 %v1620_v1  ;;  %1446 = vset.pattern.permute.xlu0 %v1621_v2 }
   0x2   :  { %10 = vsyncpa [#allocation3], 0  ;;  %114 = vperm.xlu1 %1447, %v24_v0   ;;  %37 = vperm.xlu0 %1446, %v24_v0   ;;  %v23_v3 = vld [vmem:[%s1893_s1 + $0x8] sm:$0xff]  ;;  %v22_v4 = vld [vmem:[%s1893_s1] sm:$0xff]  ;;  %v1622_v5 = vmov 0.0   ;;  %v41_v12 = vlaneseq  ;;  %vm196_vm0 = vcmask 1043456  }
   0x3   :  { %285 = vmatprep.mubr.f32.mxu0 %v1622_v5  ;;  %368 = vmatprep.mubr.f32.mxu1 %v1622_v5  ;;  %v170_v6 = vld [vmem:[%s1895_s3 + $0x10] sm:$0xf]  ;;  %v169_v7 = vld [vmem:[%s1895_s3 + $0x8] sm:$0xff]  ;;  %v168_v8 = vld [vmem:[%s1895_s3] sm:$0xff]  ;;  %vm186_vm1 = vcmask 162816  }
   0x4   :  { %v1406_v9 = vld [vmem:[%s1895_s3 + $0x20] sm:$0xff]  ;;  %v1407_v10 = vld [vmem:[%s1895_s3 + $0x28] sm:$0xf]  ;;  %v1405_v11 = vld [vmem:[%s1895_s3 + $0x18] sm:$0xff]  ;;  %v1685_v13 = vshrl.u32 %v41_v12, 7 }
   0x5   :  { %v21_v17 = vld [vmem:[%s1892_s0] sm:$0xff] }
   0x6   :  { %1448 = vset.pattern.permute.xlu1 %v1621_v2  ;;  %32 = vperm.xlu0 %1446, %v23_v3   ;;  %v43_v14 = vsub.s32 0, %v1685_v13  ;;  %v51_v15 = vsub.s32 2, %v1685_v13  ;;  %v59_v18 = vsub.s32 4, %v1685_v13  ;;  %v63_v19 = vsub.s32 5, %v1685_v13 }
   0x7   :  { %27 = vperm.xlu1 %1448, %v22_v4   ;;  %v47_v27 = vsub.s32 1, %v1685_v13  ;;  %v55_v29 = vsub.s32 3, %v1685_v13  ;;  %v67_v31 = vsub.s32 6, %v1685_v13  ;;  %v71_v41 = vsub.s32 7, %v1685_v13 }
   0x8   :  { %v44_v20 = vrot.slane %v21_v17, %v43_v14  ;;  %v52_v21 = vrot.slane %v21_v17, %v51_v15  ;;  %v1696_v22 = vrot.slane %v21_v17, %v59_v18  ;;  %v1698_v23 = vrot.slane %v21_v17, %v63_v19 }
   0x9   :  { %v48_v34 = vrot.slane %v21_v17, %v47_v27  ;;  %v56_v36 = vrot.slane %v21_v17, %v55_v29  ;;  %v68_v42 = vrot.slane %v21_v17, %v67_v31  ;;  %v72_v52 = vrot.slane %v21_v17, %v71_v41 }
   0xa   :  { %1449 = vset.pattern.permute.xlu0 %v1620_v1 }
   0xb   :  { %110 = vperm.xlu0 %1449, %v23_v3   ;;  %1450 = vset.pattern.permute.xlu1 %v1620_v1 }
   0xc   :  { %106 = vperm.xlu1 %1450, %v22_v4  }
   0xf   :  { %1452 = vset.pattern.permute.xlu0 %v1621_v2 }
  0x10   :  { %1451 = vset.pattern.permute.xlu1 %v1621_v2  ;;  %178 = vperm.xlu0 %1452, %v169_v7  }
  0x11   :  { %183 = vperm.xlu1 %1451, %v170_v6  }
  0x14   :  { %592 = vperm.xlu0 %1452, %v1406_v9  }
  0x15   :  { %173 = vperm.xlu1 %1451, %v168_v8  }
  0x19   :  { %597 = vperm.xlu1 %1451, %v1407_v10  }
  0x1d   :  { %587 = vperm.xlu1 %1451, %v1405_v11  }
  0x7d   :  { %v38_v16 = vpop.permute.xlu0 %37  ;;  %v115_v24 = vpop.permute.xlu1 %114 }
  0x7e   :  { %v97_v26 = vmul.f32 %v44_v20, %v38_v16  ;;  %v99_v28 = vmul.f32 %v52_v21, %v38_v16  ;;  %v101_v30 = vmul.f32 %v1696_v22, %v38_v16  ;;  %v102_v32 = vmul.f32 %v1698_v23, %v38_v16 }
  0x7f   :  { %v98_v47 = vmul.f32 %v48_v34, %v38_v16  ;;  %v100_v50 = vmul.f32 %v56_v36, %v38_v16  ;;  %v103_v55 = vmul.f32 %v68_v42, %v38_v16  ;;  %v104_v61 = vmul.f32 %v72_v52, %v38_v16 }
  0x80   :  { %v133_v33 = vadd.f32 %v115_v24, %v97_v26  ;;  %v135_v35 = vadd.f32 %v115_v24, %v99_v28  ;;  %v137_v39 = vadd.f32 %v115_v24, %v101_v30  ;;  %v138_v43 = vadd.f32 %v115_v24, %v102_v32 }
  0x81   :  { %v33_v25 = vpop.permute.xlu0 %32  ;;  %v134_v57 = vadd.f32 %v115_v24, %v98_v47  ;;  %v136_v59 = vadd.f32 %v115_v24, %v100_v50  ;;  %v139_v0 = vadd.f32 %v115_v24, %v103_v55  ;;  %v140_v6 = vadd.f32 %v115_v24, %v104_v61 }
  0x82   :  { %v1705_v37 = vpop.permute.xlu1 %27  ;;  %v89_v40 = vmul.f32 %v44_v20, %v33_v25  ;;  %v90_v44 = vmul.f32 %v48_v34, %v33_v25  ;;  %1454 = vtanh.f32 %v133_v33  ;;  %v91_v45 = vmul.f32 %v52_v21, %v33_v25 }
  0x83   :  { %1456 = vtanh.f32 %v135_v35  ;;  %v92_v48 = vmul.f32 %v56_v36, %v33_v25  ;;  %v82_v56 = vmul.f32 %v48_v34, %v1705_v37  ;;  %v84_v58 = vmul.f32 %v56_v36, %v1705_v37 }
  0x84   :  { %1458 = vtanh.f32 %v137_v39  ;;  %v81_v62 = vmul.f32 %v44_v20, %v1705_v37  ;;  %v83_v1 = vmul.f32 %v52_v21, %v1705_v37  ;;  %v93_v3 = vmul.f32 %v1696_v22, %v33_v25 }
  0x85   :  { %1460 = vtanh.f32 %v138_v43  ;;  %v94_v7 = vmul.f32 %v1698_v23, %v33_v25  ;;  %v96_v8 = vmul.f32 %v72_v52, %v33_v25  ;;  %v95_v11 = vmul.f32 %v68_v42, %v33_v25 }
  0x86   :  { %v111_v38 = vpop.permute.xlu0 %110  ;;  %v85_v16 = vmul.f32 %v1696_v22, %v1705_v37  ;;  %v86_v19 = vmul.f32 %v1698_v23, %v1705_v37  ;;  %v88_v24 = vmul.f32 %v72_v52, %v1705_v37  ;;  %v87_v27 = vmul.f32 %v68_v42, %v1705_v37  ;;  %v165_v37 = vld [vmem:[%s1894_s2] sm:$0xff] }
  0x87   :  { %v125_v46 = vadd.f32 %v111_v38, %v89_v40  ;;  %v126_v49 = vadd.f32 %v111_v38, %v90_v44  ;;  %v127_v51 = vadd.f32 %v111_v38, %v91_v45  ;;  %v128_v53 = vadd.f32 %v111_v38, %v92_v48  ;;  %v107_v54 = vpop.permute.xlu1 %106  ;;  %v166_v44 = vld [vmem:[%s1894_s2 + $0x8] sm:$0xff] }
  0x88   :  { %v118_v60 = vadd.f32 %v107_v54, %v82_v56  ;;  %v120_v63 = vadd.f32 %v107_v54, %v84_v58  ;;  %v117_v2 = vadd.f32 %v107_v54, %v81_v62  ;;  %v119_v4 = vadd.f32 %v107_v54, %v83_v1 }
  0x89   :  { %1462 = vtanh.f32 %v125_v46  ;;  %v129_v9 = vadd.f32 %v111_v38, %v93_v3  ;;  %v130_v12 = vadd.f32 %v111_v38, %v94_v7  ;;  %v132_v17 = vadd.f32 %v111_v38, %v96_v8 }
  0x8a   :  { %1464 = vtanh.f32 %v126_v49  ;;  %v131_v20 = vadd.f32 %v111_v38, %v95_v11  ;;  %v121_v26 = vadd.f32 %v107_v54, %v85_v16  ;;  %v122_v28 = vadd.f32 %v107_v54, %v86_v19  ;;  %v167_v49 = vld [vmem:[%s1894_s2 + $0x10] sm:$0xf] }
  0x8b   :  { %1466 = vtanh.f32 %v127_v51  ;;  %v124_v22 = vadd.f32 %v107_v54, %v88_v24  ;;  %v123_v31 = vadd.f32 %v107_v54, %v87_v27 }
  0x8c   :  { %1468 = vtanh.f32 %v128_v53  ;;  %v1761_v51 = vpop.permute.xlu1 %183 }
  0x8d   :  { %1470 = vtanh.f32 %v134_v57  ;;  %v1765_v57 = vpop.permute.xlu0 %178 }
  0x8e   :  { %1472 = vtanh.f32 %v136_v59 }
  0x8f   :  { %1474 = vtanh.f32 %v118_v60  ;;  %v1455_v10 = vpop.eup %1454 }
  0x90   :  { %1476 = vtanh.f32 %v120_v63  ;;  %v1457_v15 = vpop.eup %1456  ;;  %v1763_v55 = vpop.permute.xlu1 %173 }
  0x91   :  { %1478 = vtanh.f32 %v139_v0  ;;  %v1459_v18 = vpop.eup %1458 }
  0x92   :  { %1480 = vtanh.f32 %v117_v2  ;;  %v1461_v21 = vpop.eup %1460 }
  0x93   :  { %1482 = vtanh.f32 %v119_v4 }
  0x94   :  { %1484 = vtanh.f32 %v140_v6 }
  0x95   :  { %1486 = vtanh.f32 %v129_v9 }
  0x96   :  { %v1463_v25 = vpop.eup %1462  ;;  %1488 = vtanh.f32 %v130_v12 }
  0x97   :  { %v1465_v29 = vpop.eup %1464  ;;  %1490 = vtanh.f32 %v132_v17 }
  0x98   :  { %v1467_v30 = vpop.eup %1466  ;;  %1492 = vtanh.f32 %v131_v20 }
  0x99   :  { %v1469_v32 = vpop.eup %1468  ;;  %1494 = vtanh.f32 %v121_v26 }
  0x9a   :  { %v1471_v23 = vpop.eup %1470  ;;  %1496 = vtanh.f32 %v122_v28 }
  0x9b   :  { %v1473_v33 = vpop.eup %1472  ;;  %1498 = vtanh.f32 %v124_v22  ;;  %1382 = vmatprep.subr.msk.mxu0 %vm196_vm0, %v1471_v23 }
  0x9c   :  { %v1475_v34 = vpop.eup %1474  ;;  %1500 = vtanh.f32 %v123_v31  ;;  %1387 = vmatprep.subr.msk.mxu1 %vm196_vm0, %v1473_v33  ;;  %1383 = vmatpush1.msk.msra.mxu0 %vm196_vm0, %v1455_v10 }
  0x9d   :  { %v1477_v35 = vpop.eup %1476  ;;  %1388 = vmatpush1.msk.msra.mxu1 %vm196_vm0, %v1457_v15  ;;  %249 = vmatprep.subr.mxu0 %v1465_v29 }
  0x9e   :  { %v1479_v36 = vpop.eup %1478  ;;  %332 = vmatprep.subr.mxu1 %v1469_v32  ;;  %250 = vmatpush1.msra.mxu0 %v1463_v25 }
  0x9f   :  { %v1481_v38 = vpop.eup %1480  ;;  %333 = vmatpush1.msra.mxu1 %v1467_v30  ;;  %251 = vmatprep.subr.mxu0 %v1475_v34 }
  0xa0   :  { %v1483_v39 = vpop.eup %1482  ;;  %334 = vmatprep.subr.mxu1 %v1477_v35  ;;  %252 = vmatpush1.msra.mxu0 %v1481_v38 }
  0xa1   :  { %v1485_v40 = vpop.eup %1484  ;;  %335 = vmatpush1.msra.mxu1 %v1483_v39  ;;  %1384 = vmatmul.mubr.msk.f32.vlgmr.msra.gmra.mxu0 %vm186_vm1, %v165_v37 }
  0xa2   :  { %v1487_v41 = vpop.eup %1486  ;;  %1389 = vmatmul.mubr.msk.f32.vlgmr.msra.gmra.mxu1 %vm186_vm1, %v165_v37  ;;  %1392 = vmatprep.subr.msk.mxu0 %vm196_vm0, %v1461_v21 }
  0xa3   :  { %v1489_v42 = vpop.eup %1488  ;;  %1397 = vmatprep.subr.msk.mxu1 %vm196_vm0, %v1485_v40  ;;  %1393 = vmatpush1.msk.msra.mxu0 %vm196_vm0, %v1459_v18 }
  0xa4   :  { %v1491_v43 = vpop.eup %1490  ;;  %1398 = vmatpush1.msk.msra.mxu1 %vm196_vm0, %v1479_v36  ;;  %415 = vmatprep.subr.mxu0 %v1489_v42 }
  0xa5   :  { %v1493_v45 = vpop.eup %1492  ;;  %498 = vmatprep.subr.mxu1 %v1491_v43  ;;  %291 = vmatprep.mubr.f32.mxu0 %v1622_v5 }
  0xa6   :  { %v1495_v46 = vpop.eup %1494  ;;  %374 = vmatprep.mubr.f32.mxu1 %v1622_v5  ;;  %416 = vmatpush1.msra.mxu0 %v1487_v41 }
  0xa7   :  { %v1497_v47 = vpop.eup %1496  ;;  %499 = vmatpush1.msra.mxu1 %v1493_v45  ;;  %1385 = vmatmul.mubr.msk.f32.gmra.mxu0 %vm186_vm1, %v166_v44 }
  0xa8   :  { %v1499_v48 = vpop.eup %1498  ;;  %1390 = vmatmul.mubr.msk.f32.gmra.mxu1 %vm186_vm1, %v166_v44  ;;  %417 = vmatprep.subr.mxu0 %v1497_v47 }
  0xa9   :  { %v1501_v50 = vpop.eup %1500  ;;  %500 = vmatprep.subr.mxu1 %v1499_v48  ;;  %418 = vmatpush1.msra.mxu0 %v1495_v46 }
  0xaa   :  { %501 = vmatpush1.msra.mxu1 %v1501_v50  ;;  %297 = vmatprep.mubr.f32.mxu0 %v1622_v5 }
  0xab   :  { %380 = vmatprep.mubr.f32.mxu1 %v1622_v5  ;;  %1386 = vmatmul.mubr.msk.f32.gmra.mxu0 %vm186_vm1, %v167_v49 }
  0xac   :  { %1391 = vmatmul.mubr.msk.f32.gmra.mxu1 %vm186_vm1, %v167_v49  ;;  %451 = vmatprep.mubr.f32.mxu0 %v1622_v5 }
  0xad   :  { %534 = vmatprep.mubr.f32.mxu1 %v1622_v5 }
  0xaf   :  { %1394 = vmatmul.mubr.msk.f32.vlgmr.msra.gmra.mxu0 %vm186_vm1, %v165_v37 }
  0xb0   :  { %1399 = vmatmul.mubr.msk.f32.vlgmr.msra.gmra.mxu1 %vm186_vm1, %v165_v37  ;;  %457 = vmatprep.mubr.f32.mxu0 %v1622_v5 }
  0xb1   :  { %540 = vmatprep.mubr.f32.mxu1 %v1622_v5 }
  0xb3   :  { %1395 = vmatmul.mubr.msk.f32.gmra.mxu0 %vm186_vm1, %v166_v44 }
  0xb4   :  { %1400 = vmatmul.mubr.msk.f32.gmra.mxu1 %vm186_vm1, %v166_v44  ;;  %463 = vmatprep.mubr.f32.mxu0 %v1622_v5 }
  0xb5   :  { %546 = vmatprep.mubr.f32.mxu1 %v1622_v5 }
  0xb7   :  { %1396 = vmatmul.mubr.msk.f32.gmra.mxu0 %vm186_vm1, %v167_v49 }
  0xb8   :  { %1401 = vmatmul.mubr.msk.f32.gmra.mxu1 %vm186_vm1, %v167_v49  ;;  %697 = vmatprep.mubr.f32.mxu0 %v1622_v5 }
  0xb9   :  { %780 = vmatprep.mubr.f32.mxu1 %v1622_v5 }
 0x161   :  { %v287_v52 = vpop.f32.mrf.mxu0 }
 0x162   :  { %v370_v53 = vpop.f32.mrf.mxu1  ;;  %v288_v58 = vadd.f32 %v287_v52, %v1763_v55 }
 0x163   :  { %v289_v54 = vpop.f32.mrf.mxu0  ;;  %v371_v19 = vadd.f32 %v370_v53, %v1763_v55 }
 0x164   :  { %v372_v56 = vpop.f32.mrf.mxu1  ;;  %v290_v60 = vadd.f32 %v289_v54, %v1763_v55  ;;  %1502 = vtanh.f32 %v288_v58 }
 0x165   :  { %v373_v17 = vadd.f32 %v372_v56, %v1763_v55 }
 0x166   :  { %1504 = vtanh.f32 %v290_v60  ;;  %v1404_v60 = vld [vmem:[%s1894_s2 + $0x28] sm:$0xf] }
 0x167   :  { %v293_v59 = vpop.f32.mrf.mxu0 }
 0x168   :  { %v376_v61 = vpop.f32.mrf.mxu1  ;;  %v294_v62 = vadd.f32 %v293_v59, %v1765_v57 }
 0x169   :  { %v295_v63 = vpop.f32.mrf.mxu0  ;;  %v377_v15 = vadd.f32 %v376_v61, %v1765_v57 }
 0x16a   :  { %v296_v0 = vadd.f32 %v295_v63, %v1765_v57  ;;  %v378_v1 = vpop.f32.mrf.mxu1  ;;  %1506 = vtanh.f32 %v294_v62 }
 0x16b   :  { %v299_v2 = vpop.f32.mrf.mxu0  ;;  %v379_v10 = vadd.f32 %v378_v1, %v1765_v57 }
 0x16c   :  { %v300_v3 = vadd.f32 %v299_v2, %v1761_v51  ;;  %v382_v4 = vpop.f32.mrf.mxu1  ;;  %1508 = vtanh.f32 %v296_v0 }
 0x16d   :  { %v301_v6 = vpop.f32.mrf.mxu0  ;;  %v383_v7 = vadd.f32 %v382_v4, %v1761_v51  ;;  %v1835_v4 = vld [vmem:[%s1896_s4] sm:$0x1]  ;;  %s1625_s4 = smov [#allocation2]  }
 0x16e   :  { %v302_v8 = vadd.f32 %v301_v6, %v1761_v51  ;;  %v384_v9 = vpop.f32.mrf.mxu1  ;;  %1510 = vtanh.f32 %v300_v3  ;;  %v1623_v6 = vmov 20   ;;  %s1374_s23 = sshll.u32 %s1625_s4, 4  ;;  %s1375_s23 = int_to_ptr.vmem [resolvable:$true] %s1374_s23 }
 0x16f   :  { %v385_v11 = vadd.f32 %v384_v9, %v1761_v51  ;;  %v453_v12 = vpop.f32.mrf.mxu0  ;;  %1453 = vset.pattern.permute.xlu0 %v1623_v6  ;;  %s1598_s24 = scalar_lea.vmem %s1375_s23, 128  ;;  %p1603_p1 = scmp.lt.s32.totalorder %s1375_s23, %s1375_s23 }
 0x170   :  { %1512 = vtanh.f32 %v302_v8  ;;  %v536_v16 = vpop.f32.mrf.mxu1  ;;  %v454_v24 = vadd.f32 %v453_v12, %v1763_v55  ;;  %992 = vperm.xlu0 %1453, %v1835_v4   ;;  %p1599_p0 = scmp.ne.s32.totalorder %s1375_s23, %s1598_s24  ;;  %p1604_p2 = scmp.lt.s32.totalorder %s1598_s24, %s1598_s24 }
 0x171   :  { %1514 = vtanh.f32 %v385_v11  ;;  %v455_v18 = vpop.f32.mrf.mxu0  ;;  %v1503_v30 = vpop.eup %1502  ;;  %v537_v48 = vadd.f32 %v536_v16, %v1763_v55 }
 0x172   :  { %1516 = vtanh.f32 %v383_v7  ;;  %v538_v20 = vpop.f32.mrf.mxu1  ;;  %v456_v25 = vadd.f32 %v455_v18, %v1763_v55  ;;  %v1838_v7 = vpop.permute.xlu1 %597  ;;  %p1605_p3 = por %p1604_p2, %p1603_p1 }
 0x173   :  { %1518 = vtanh.f32 %v379_v10  ;;  %v459_v21 = vpop.f32.mrf.mxu0  ;;  %v1505_v23 = vpop.eup %1504  ;;  %v539_v46 = vadd.f32 %v538_v20, %v1763_v55  ;;  %v1403_v55 = vld [vmem:[%s1894_s2 + $0x20] sm:$0xff] }
 0x174   :  { %1520 = vtanh.f32 %v377_v15  ;;  %v542_v26 = vpop.f32.mrf.mxu1  ;;  %v460_v28 = vadd.f32 %v459_v21, %v1765_v57  ;;  %p1606_p4 = pnand %p1605_p3, %p1599_p0 }
 0x175   :  { %1522 = vtanh.f32 %v373_v17  ;;  %v461_v27 = vpop.f32.mrf.mxu0  ;;  %v543_v44 = vadd.f32 %v542_v26, %v1765_v57  ;;  %v1843_v17 = vpop.permute.xlu0 %592 }
 0x176   :  { %1524 = vtanh.f32 %v371_v19  ;;  %v544_v29 = vpop.f32.mrf.mxu1  ;;  %v462_v39 = vadd.f32 %v461_v27, %v1765_v57  ;;  %v1840_v11 = vpop.permute.xlu1 %587 }
 0x177   :  { %v465_v22 = vpop.f32.mrf.mxu0  ;;  %1526 = vtanh.f32 %v454_v24  ;;  %v1507_v34 = vpop.eup %1506  ;;  %v545_v42 = vadd.f32 %v544_v29, %v1765_v57 }
 0x178   :  { %v466_v31 = vadd.f32 %v465_v22, %v1761_v51  ;;  %v548_v32 = vpop.f32.mrf.mxu1  ;;  %1528 = vtanh.f32 %v456_v25 }
 0x179   :  { %v467_v33 = vpop.f32.mrf.mxu0  ;;  %1530 = vtanh.f32 %v460_v28  ;;  %v549_v35 = vadd.f32 %v548_v32, %v1761_v51  ;;  %v1509_v38 = vpop.eup %1508 }
 0x17a   :  { %v468_v36 = vadd.f32 %v467_v33, %v1761_v51  ;;  %v550_v37 = vpop.f32.mrf.mxu1  ;;  %1532 = vtanh.f32 %v466_v31 }
 0x17b   :  { %v551_v40 = vadd.f32 %v550_v37, %v1761_v51  ;;  %v1511_v41 = vpop.eup %1510  ;;  %v1402_v51 = vld [vmem:[%s1894_s2 + $0x18] sm:$0xff] }
 0x17c   :  { %1534 = vtanh.f32 %v468_v36 }
 0x17d   :  { %v1513_v43 = vpop.eup %1512  ;;  %1536 = vtanh.f32 %v551_v40 }
 0x17e   :  { %v1515_v45 = vpop.eup %1514  ;;  %1538 = vtanh.f32 %v549_v35  ;;  %1408 = vmatprep.subr.msk.mxu0 %vm196_vm0, %v1513_v43 }
 0x17f   :  { %v1517_v47 = vpop.eup %1516  ;;  %1540 = vtanh.f32 %v462_v39  ;;  %1413 = vmatprep.subr.msk.mxu1 %vm196_vm0, %v1515_v45  ;;  %1409 = vmatpush1.msk.msra.mxu0 %vm196_vm0, %v1511_v41 }
 0x180   :  { %v1519_v49 = vpop.eup %1518  ;;  %1542 = vtanh.f32 %v545_v42  ;;  %1414 = vmatpush1.msk.msra.mxu1 %vm196_vm0, %v1517_v47  ;;  %661 = vmatprep.subr.mxu0 %v1509_v38 }
 0x181   :  { %v1521_v50 = vpop.eup %1520  ;;  %1544 = vtanh.f32 %v543_v44  ;;  %744 = vmatprep.subr.mxu1 %v1519_v49  ;;  %662 = vmatpush1.msra.mxu0 %v1507_v34 }
 0x182   :  { %v1523_v52 = vpop.eup %1522  ;;  %1546 = vtanh.f32 %v539_v46  ;;  %745 = vmatpush1.msra.mxu1 %v1521_v50  ;;  %663 = vmatprep.subr.mxu0 %v1505_v23 }
 0x183   :  { %v1525_v53 = vpop.eup %1524  ;;  %1548 = vtanh.f32 %v537_v48  ;;  %746 = vmatprep.subr.mxu1 %v1523_v52  ;;  %664 = vmatpush1.msra.mxu0 %v1503_v30 }
 0x184   :  { %747 = vmatpush1.msra.mxu1 %v1525_v53  ;;  %1410 = vmatmul.mubr.msk.f32.vlgmr.msra.gmra.mxu0 %vm186_vm1, %v1402_v51  ;;  %v1527_v54 = vpop.eup %1526 }
 0x185   :  { %1415 = vmatmul.mubr.msk.f32.vlgmr.msra.gmra.mxu1 %vm186_vm1, %v1402_v51  ;;  %703 = vmatprep.mubr.f32.mxu0 %v1622_v5  ;;  %v1529_v56 = vpop.eup %1528 }
 0x186   :  { %786 = vmatprep.mubr.f32.mxu1 %v1622_v5  ;;  %v1531_v57 = vpop.eup %1530 }
 0x187   :  { %v1533_v58 = vpop.eup %1532 }
 0x188   :  { %1411 = vmatmul.mubr.msk.f32.gmra.mxu0 %vm186_vm1, %v1403_v55 }
 0x189   :  { %v1535_v59 = vpop.eup %1534  ;;  %1416 = vmatmul.mubr.msk.f32.gmra.mxu1 %vm186_vm1, %v1403_v55  ;;  %709 = vmatprep.mubr.f32.mxu0 %v1622_v5 }
 0x18a   :  { %v1537_v61 = vpop.eup %1536  ;;  %1418 = vmatprep.subr.msk.mxu0 %vm196_vm0, %v1535_v59  ;;  %792 = vmatprep.mubr.f32.mxu1 %v1622_v5 }
 0x18b   :  { %v1539_v62 = vpop.eup %1538  ;;  %1423 = vmatprep.subr.msk.mxu1 %vm196_vm0, %v1537_v61  ;;  %1419 = vmatpush1.msk.msra.mxu0 %vm196_vm0, %v1533_v58 }
 0x18c   :  { %v1541_v63 = vpop.eup %1540  ;;  %1424 = vmatpush1.msk.msra.mxu1 %vm196_vm0, %v1539_v62  ;;  %1412 = vmatmul.mubr.msk.f32.gmra.mxu0 %vm186_vm1, %v1404_v60 }
 0x18d   :  { %v1543_v0 = vpop.eup %1542  ;;  %1417 = vmatmul.mubr.msk.f32.gmra.mxu1 %vm186_vm1, %v1404_v60  ;;  %827 = vmatprep.subr.mxu0 %v1541_v63 }
 0x18e   :  { %v1545_v1 = vpop.eup %1544  ;;  %910 = vmatprep.subr.mxu1 %v1543_v0  ;;  %828 = vmatpush1.msra.mxu0 %v1531_v57 }
 0x18f   :  { %v1547_v2 = vpop.eup %1546  ;;  %911 = vmatpush1.msra.mxu1 %v1545_v1  ;;  %829 = vmatprep.subr.mxu0 %v1529_v56 }
 0x190   :  { %v1549_v3 = vpop.eup %1548  ;;  %912 = vmatprep.subr.mxu1 %v1547_v2  ;;  %830 = vmatpush1.msra.mxu0 %v1527_v54 }
 0x191   :  { %863 = vmatprep.mubr.f32.mxu0 %v1622_v5  ;;  %913 = vmatpush1.msra.mxu1 %v1549_v3 }
 0x192   :  { %946 = vmatprep.mubr.f32.mxu1 %v1622_v5  ;;  %1420 = vmatmul.mubr.msk.f32.vlgmr.msra.gmra.mxu0 %vm186_vm1, %v1402_v51 }
 0x193   :  { %1425 = vmatmul.mubr.msk.f32.vlgmr.msra.gmra.mxu1 %vm186_vm1, %v1402_v51  ;;  %869 = vmatprep.mubr.f32.mxu0 %v1622_v5 }
 0x194   :  { %952 = vmatprep.mubr.f32.mxu1 %v1622_v5 }
 0x196   :  { %1421 = vmatmul.mubr.msk.f32.gmra.mxu0 %vm186_vm1, %v1403_v55 }
 0x197   :  { %1426 = vmatmul.mubr.msk.f32.gmra.mxu1 %vm186_vm1, %v1403_v55  ;;  %875 = vmatprep.mubr.f32.mxu0 %v1622_v5 }
 0x198   :  { %958 = vmatprep.mubr.f32.mxu1 %v1622_v5 }
 0x19a   :  { %1422 = vmatmul.mubr.msk.f32.gmra.mxu0 %vm186_vm1, %v1404_v60 }
 0x19b   :  { %1427 = vmatmul.mubr.msk.f32.gmra.mxu1 %vm186_vm1, %v1404_v60  ;;  %1089 = vmatprep.mubr.f32.mxu0 %v1622_v5 }
 0x19c   :  { %1160 = vmatprep.mubr.f32.mxu1 %v1622_v5 }
 0x244   :  { %v699_v8 = vpop.f32.mrf.mxu0 }
 0x245   :  { %v782_v9 = vpop.f32.mrf.mxu1  ;;  %v700_v15 = vadd.f32 %v699_v8, %v1840_v11 }
 0x246   :  { %v701_v10 = vpop.f32.mrf.mxu0  ;;  %v783_v36 = vadd.f32 %v782_v9, %v1840_v11 }
 0x247   :  { %v784_v12 = vpop.f32.mrf.mxu1  ;;  %v702_v18 = vadd.f32 %v701_v10, %v1840_v11  ;;  %1550 = vtanh.f32 %v700_v15 }
 0x248   :  { %v705_v16 = vpop.f32.mrf.mxu0  ;;  %v785_v34 = vadd.f32 %v784_v12, %v1840_v11 }
 0x249   :  { %v788_v19 = vpop.f32.mrf.mxu1  ;;  %v706_v20 = vadd.f32 %v705_v16, %v1843_v17  ;;  %1552 = vtanh.f32 %v702_v18 }
 0x24a   :  { %v707_v21 = vpop.f32.mrf.mxu0  ;;  %v789_v33 = vadd.f32 %v788_v19, %v1843_v17 }
 0x24b   :  { %v708_v24 = vadd.f32 %v707_v21, %v1843_v17  ;;  %v790_v26 = vpop.f32.mrf.mxu1  ;;  %1554 = vtanh.f32 %v706_v20 }
 0x24c   :  { %v711_v25 = vpop.f32.mrf.mxu0  ;;  %v791_v32 = vadd.f32 %v790_v26, %v1843_v17  ;;  %v993_v26 = vpop.permute.xlu0 %992 }
 0x24d   :  { %v712_v27 = vadd.f32 %v711_v25, %v1838_v7  ;;  %v794_v28 = vpop.f32.mrf.mxu1  ;;  %1556 = vtanh.f32 %v708_v24 }
 0x24e   :  { %v713_v29 = vpop.f32.mrf.mxu0  ;;  %v795_v22 = vadd.f32 %v794_v28, %v1838_v7  ;;  %v1624_v28 = vmov 1966171168  }
 0x24f   :  { %v714_v30 = vadd.f32 %v713_v29, %v1838_v7  ;;  %v796_v31 = vpop.f32.mrf.mxu1  ;;  %1558 = vtanh.f32 %v712_v27  ;;  %v1322_v29 = vunpack.c.l.s4 %v1624_v28 }
 0x250   :  { %v797_v23 = vadd.f32 %v796_v31, %v1838_v7 }
 0x251   :  { %1560 = vtanh.f32 %v714_v30 }
 0x252   :  { %1562 = vtanh.f32 %v797_v23  ;;  %v865_v35 = vpop.f32.mrf.mxu0 }
 0x253   :  { %1564 = vtanh.f32 %v795_v22  ;;  %v948_v37 = vpop.f32.mrf.mxu1  ;;  %v866_v40 = vadd.f32 %v865_v35, %v1840_v11  ;;  %v998_v22 = vrot.slane %v993_v26, %v43_v14 }
 0x254   :  { %1566 = vtanh.f32 %v791_v32  ;;  %v867_v38 = vpop.f32.mrf.mxu0  ;;  %v1551_v46 = vpop.eup %1550  ;;  %v949_v6 = vadd.f32 %v948_v37, %v1840_v11  ;;  %v1323_v32 = vunpack.c.0.s8 %v1322_v29 }
 0x255   :  { %1568 = vtanh.f32 %v789_v33  ;;  %v950_v39 = vpop.f32.mrf.mxu1  ;;  %v868_v42 = vadd.f32 %v867_v38, %v1840_v11 }
 0x256   :  { %1570 = vtanh.f32 %v785_v34  ;;  %v871_v41 = vpop.f32.mrf.mxu0  ;;  %v1553_v49 = vpop.eup %1552  ;;  %v951_v2 = vadd.f32 %v950_v39, %v1840_v11  ;;  %v1326_v37 = vsub.s32 %v1323_v32, %v1685_v13 }
 0x257   :  { %1572 = vtanh.f32 %v783_v36  ;;  %v954_v43 = vpop.f32.mrf.mxu1  ;;  %v872_v44 = vadd.f32 %v871_v41, %v1843_v17 }
 0x258   :  { %v873_v45 = vpop.f32.mrf.mxu0  ;;  %1574 = vtanh.f32 %v866_v40  ;;  %v1555_v51 = vpop.eup %1554  ;;  %v955_v0 = vadd.f32 %v954_v43, %v1843_v17 }
 0x259   :  { %v874_v47 = vadd.f32 %v873_v45, %v1843_v17  ;;  %v956_v48 = vpop.f32.mrf.mxu1  ;;  %1576 = vtanh.f32 %v868_v42 }
 0x25a   :  { %v877_v50 = vpop.f32.mrf.mxu0  ;;  %v1557_v54 = vpop.eup %1556  ;;  %1578 = vtanh.f32 %v872_v44  ;;  %v957_v61 = vadd.f32 %v956_v48, %v1843_v17 }
 0x25b   :  { %v878_v52 = vadd.f32 %v877_v50, %v1838_v7  ;;  %v960_v53 = vpop.f32.mrf.mxu1  ;;  %1580 = vtanh.f32 %v874_v47 }
 0x25c   :  { %v879_v55 = vpop.f32.mrf.mxu0  ;;  %v1559_v56 = vpop.eup %1558  ;;  %v961_v57 = vadd.f32 %v960_v53, %v1838_v7 }
 0x25d   :  { %v880_v58 = vadd.f32 %v879_v55, %v1838_v7  ;;  %v962_v59 = vpop.f32.mrf.mxu1  ;;  %1582 = vtanh.f32 %v878_v52 }
 0x25e   :  { %v1561_v60 = vpop.eup %1560  ;;  %v963_v62 = vadd.f32 %v962_v59, %v1838_v7 }
 0x25f   :  { %v1563_v63 = vpop.eup %1562  ;;  %1584 = vtanh.f32 %v880_v58  ;;  %1428 = vmatprep.subr.msk.mxu0 %vm196_vm0, %v1561_v60 }
 0x260   :  { %v1565_v1 = vpop.eup %1564  ;;  %1586 = vtanh.f32 %v963_v62  ;;  %1431 = vmatprep.subr.msk.mxu1 %vm196_vm0, %v1563_v63  ;;  %1429 = vmatpush1.msk.msra.mxu0 %vm196_vm0, %v1559_v56 }
 0x261   :  { %v1567_v3 = vpop.eup %1566  ;;  %1588 = vtanh.f32 %v961_v57  ;;  %1432 = vmatpush1.msk.msra.mxu1 %vm196_vm0, %v1565_v1  ;;  %1053 = vmatprep.subr.mxu0 %v1557_v54 }
 0x262   :  { %v1569_v7 = vpop.eup %1568  ;;  %1590 = vtanh.f32 %v957_v61  ;;  %1124 = vmatprep.subr.mxu1 %v1567_v3  ;;  %1054 = vmatpush1.msra.mxu0 %v1555_v51 }
 0x263   :  { %v1571_v8 = vpop.eup %1570  ;;  %1592 = vtanh.f32 %v955_v0  ;;  %1125 = vmatpush1.msra.mxu1 %v1569_v7  ;;  %1055 = vmatprep.subr.mxu0 %v1553_v49 }
 0x264   :  { %v1573_v9 = vpop.eup %1572  ;;  %1594 = vtanh.f32 %v951_v2  ;;  %1126 = vmatprep.subr.mxu1 %v1571_v8  ;;  %1056 = vmatpush1.msra.mxu0 %v1551_v46 }
 0x265   :  { %1596 = vtanh.f32 %v949_v6  ;;  %1127 = vmatpush1.msra.mxu1 %v1573_v9  ;;  %1430 = vmatmul.mubr.msk.f32.vlgmr.msra.gmra.mxu0 %vm186_vm1, %v1835_v4  ;;  %v1575_v10 = vpop.eup %1574 }
 0x266   :  { %1433 = vmatmul.mubr.msk.f32.vlgmr.msra.gmra.mxu1 %vm186_vm1, %v1835_v4  ;;  %1231 = vmatprep.mubr.f32.mxu0 %v1622_v5  ;;  %v1577_v11 = vpop.eup %1576 }
 0x267   :  { %1302 = vmatprep.mubr.f32.mxu1 %v1622_v5  ;;  %v1579_v12 = vpop.eup %1578 }
 0x268   :  { %v1581_v15 = vpop.eup %1580 }
 0x26a   :  { %v1583_v16 = vpop.eup %1582 }
 0x26c   :  { %v1585_v17 = vpop.eup %1584 }
 0x26d   :  { %v1587_v18 = vpop.eup %1586  ;;  %1434 = vmatprep.subr.msk.mxu0 %vm196_vm0, %v1585_v17 }
 0x26e   :  { %v1589_v19 = vpop.eup %1588  ;;  %1437 = vmatprep.subr.msk.mxu1 %vm196_vm0, %v1587_v18  ;;  %1435 = vmatpush1.msk.msra.mxu0 %vm196_vm0, %v1583_v16 }
 0x26f   :  { %v1591_v20 = vpop.eup %1590  ;;  %1438 = vmatpush1.msk.msra.mxu1 %vm196_vm0, %v1589_v19  ;;  %1195 = vmatprep.subr.mxu0 %v1581_v15 }
 0x270   :  { %v1593_v21 = vpop.eup %1592  ;;  %1266 = vmatprep.subr.mxu1 %v1591_v20  ;;  %1196 = vmatpush1.msra.mxu0 %v1579_v12 }
 0x271   :  { %v1595_v5 = vpop.eup %1594  ;;  %1267 = vmatpush1.msra.mxu1 %v1593_v21  ;;  %1197 = vmatprep.subr.mxu0 %v1577_v11 }
 0x272   :  { %v1597_v24 = vpop.eup %1596  ;;  %1268 = vmatprep.subr.mxu1 %v1595_v5  ;;  %1198 = vmatpush1.msra.mxu0 %v1575_v10 }
 0x273   :  { %1269 = vmatpush1.msra.mxu1 %v1597_v24  ;;  %1436 = vmatmul.mubr.msk.f32.vlgmr.msra.gmra.mxu0 %vm186_vm1, %v1835_v4 }
 0x274   :  { %1439 = vmatmul.mubr.msk.f32.vlgmr.msra.gmra.mxu1 %vm186_vm1, %v1835_v4 }
 0x325   :  { %v1091_v25 = vpop.f32.mrf.mxu0 }
 0x326   :  { %v1162_v27 = vpop.f32.mrf.mxu1  ;;  %v1092_v23 = vadd.f32 %v1091_v25, %v998_v22 }
 0x327   :  { %v1093_v30 = vpop.f32.mrf.mxu0  ;;  %v1163_v34 = vadd.f32 %v1162_v27, %v998_v22 }
 0x328   :  { %v1164_v31 = vpop.f32.mrf.mxu1  ;;  %v1094_v33 = vadd.f32 %v1093_v30, %v998_v22 }
 0x329   :  { %v1165_v35 = vadd.f32 %v1164_v31, %v998_v22 }
 0x32a   :  { %v1317_v38 = vcombine.low %v1092_v23, %v1094_v33 }
 0x32b   :  { %v1318_v4 = vcombine.low %v1163_v34, %v1165_v35 }
 0x32c   :  { %v1327_v14 = vrot.slane %v1317_v38, %v1326_v37 }
 0x32d   :  { %v1334_v46 = vrot.slane %v1318_v4, %v1326_v37 }
 0x32f   :  { %v1349_v51 = vcombine.low %v1327_v14, %v1334_v46 }
 0x331   :  { %v1357_v13 = vrot.slane %v1349_v51, %v1326_v37 }
 0x333   :  { %v1233_v36 = vpop.f32.mrf.mxu0 }
 0x334   :  { %v1304_v39 = vpop.f32.mrf.mxu1  ;;  %v1234_v41 = vadd.f32 %v1233_v36, %v998_v22 }
 0x335   :  { %v1235_v40 = vpop.f32.mrf.mxu0  ;;  %v1305_v44 = vadd.f32 %v1304_v39, %v998_v22 }
 0x336   :  { %v1236_v42 = vadd.f32 %v1235_v40, %v998_v22  ;;  %v1306_v43 = vpop.f32.mrf.mxu1 }
 0x337   :  { %v1307_v45 = vadd.f32 %v1306_v43, %v998_v22 }
 0x338   :  { %v1319_v47 = vcombine.low %v1234_v41, %v1236_v42 }
 0x339   :  { %v1320_v48 = vcombine.low %v1305_v44, %v1307_v45 }
 0x33a   :  { %v1341_v49 = vrot.slane %v1319_v47, %v1326_v37 }
 0x33b   :  { %v1348_v50 = vrot.slane %v1320_v48, %v1326_v37 }
 0x33d   :  { %v1350_v52 = vcombine.low %v1341_v49, %v1348_v50 }
 0x33f   :  { %v1364_v53 = vrot.slane %v1350_v52, %v1326_v37 }
 0x341   :  { %v1365_v54 = vcombine.low %v1357_v13, %v1364_v53 }
 0x343   :  { %1367 = vst [vmem:[#allocation2] sm:$0xff] %v1365_v54 }
 0x344   :  { %1609 = shalt.err (!%p1606_p4)
}
 0x345   :  { %1377 = dma.vmem_to_hbm [thread:$0]  %s1375_s23, 128, %s1897_s5, [#allocation3]  }
 0x346   :  { %1618 = dma.done.wait [#allocation3], 128  }
 0x347   :  { %1619 = vsyncadd [#allocation3], 4294967168 }
 0x348   :  { %1381 = vsyncpa [#allocation3], 1 }

</bundles_post_ra>
